<compile_context>
chip_gen: v7x
topology: tpu7x:2x2x1
jax: 0.10.0
libtpu: 0.0.40
codegen_flags: <defaults>
</compile_context>

<pallas_src>
import jax
import jax.numpy as jnp
from jax.experimental import pallas as pl


def conv1x1_affine_kernel(s_ref, p_ref, o_ref):
    # s_ref: (1, Npix)     flattened stride-2/pad-1 sampled input (unpadded)
    # p_ref: (2*C, 1)      rows 0..C-1 = 12*w[c]; rows C..2C-1 = 12*(b[c]-1)
    # o_ref: (C, Npix)     unpadded lane-dense output slab
    c_out = o_ref.shape[0]
    s = s_ref[...]                        # (1, Npix) -> sublane-broadcast
    w = p_ref[0:c_out, :]                 # (C, 1)    -> lane-broadcast
    b = p_ref[c_out:2 * c_out, :]         # (C, 1)
    o_ref[...] = w * s + b                # single fused per-channel affine


def model_forward(x, weight, bias):
    """x: (1, 1, H, W) f32; weight: (C_out, 1, 1, 1); bias: (C_out,)."""
    N, Cin, H, W = x.shape
    assert N == 1 and Cin == 1
    assert H % 2 == 0 and W % 2 == 0
    C_out = weight.shape[0]
    stride, pad = 2, 1
    Ho = (H + 2 * pad - 1) // stride + 1
    Wo = (W + 2 * pad - 1) // stride + 1
    n_pix = Ho * Wo

    # --- glue: stride-2 / pad-1 sampling (pure data movement, no FLOPs) ----
    # Output pixel (i, j) taps the padded input at (2i-1, 2j-1): row/col 0 hit
    # the zero padding, rows/cols >= 1 hit odd input indices 1, 3, ...
    interior = x[0, 0, 1::2, 1::2].astype(jnp.float32)          # (Ho-1, Wo-1)
    samp = jnp.pad(interior, ((1, 0), (1, 0)))                  # (Ho, Wo)
    samp_flat = samp.reshape(1, n_pix)                          # (1, Ho*Wo)

    # --- fold "(v1 - 1) * 12" into the conv constants -----------------------
    w_col = weight.reshape(C_out, 1).astype(jnp.float32) * 12.0
    b_col = (bias.reshape(C_out, 1).astype(jnp.float32) - 1.0) * 12.0
    params = jnp.concatenate([w_col, b_col], axis=0)            # (2*C_out, 1)

    out_flat = pl.pallas_call(
        conv1x1_affine_kernel,
        out_shape=jax.ShapeDtypeStruct((C_out, n_pix), jnp.float32),
        grid=(1,),
        in_specs=[
            pl.BlockSpec((1, n_pix), lambda i: (0, 0)),
            pl.BlockSpec((2 * C_out, 1), lambda i: (0, 0)),
        ],
        out_specs=pl.BlockSpec((C_out, n_pix), lambda i: (0, 0)),
    )(samp_flat, params)

    # (C_out, Ho*Wo) -> (1, C_out, Ho, Wo): row-major contiguous => bitcast.
    return out_flat.reshape(1, C_out, Ho, Wo)


if __name__ == "__main__":
    key = jax.random.PRNGKey(0)
    kx, kw, kb = jax.random.split(key, 3)

    # Shapes implied by the module: x = (1, 1, 64, 64), Conv2d(1, 8, 1, stride=2, padding=1)
    x = jax.random.normal(kx, (1, 1, 64, 64), jnp.float32)
    weight = jax.random.normal(kw, (8, 1, 1, 1), jnp.float32) * 0.5
    bias = jax.random.normal(kb, (8,), jnp.float32) * 0.1

    fwd = jax.jit(model_forward)
    out = jax.block_until_ready(fwd(x, weight, bias))

    # Reference check against XLA's conv (same semantics as torch.nn.Conv2d).
    ref_conv = jax.lax.conv_general_dilated(
        x, weight, window_strides=(2, 2), padding=((1, 1), (1, 1)),
        dimension_numbers=("NCHW", "OIHW", "NCHW"),
        precision=jax.lax.Precision.HIGHEST,
    ) + bias[None, :, None, None]
    ref = (ref_conv - 1.0) * 12.0

    assert out.shape == (1, 8, 33, 33), out.shape
    assert jnp.allclose(out, ref, atol=1e-4, rtol=1e-4)
    print("KERNEL_OK")
</pallas_src>

<mosaic_0001>
module attributes {stable_mosaic.version = 11 : i64} {
  func.func @conv1x1_affine_kernel(%arg0: i32, %arg1: memref<1x1089xf32, #tpu.memory_space<vmem>>, %arg2: memref<16x1xf32, #tpu.memory_space<vmem>>, %arg3: memref<8x1089xf32, #tpu.memory_space<vmem>>) attributes {dimension_semantics = [#tpu.dimension_semantics<arbitrary>], iteration_bounds = array<i64: 1>, scalar_prefetch = 0 : i64, scratch_operands = 0 : i64, tpu.core_type = #tpu.core_type<tc>, window_params = [{pipeline_mode = #tpu.pipeline_mode<synchronous>, transform_indices = @transform_0, window_bounds = array<i64: 1, 1089>}, {pipeline_mode = #tpu.pipeline_mode<synchronous>, transform_indices = @transform_1, window_bounds = array<i64: 16, 1>}, {pipeline_mode = #tpu.pipeline_mode<synchronous>, transform_indices = @transform_2, window_bounds = array<i64: 8, 1089>}]} {
    %c0 = arith.constant 0 : index
    %c0_0 = arith.constant 0 : index
    %0 = vector.load %arg1[%c0, %c0_0] : memref<1x1089xf32, #tpu.memory_space<vmem>>, vector<1x1089xf32>
    %c0_1 = arith.constant 0 : index
    %c0_2 = arith.constant 0 : index
    %1 = vector.load %arg2[%c0_1, %c0_2] : memref<16x1xf32, #tpu.memory_space<vmem>>, vector<8x1xf32>
    %c8 = arith.constant 8 : index
    %c0_3 = arith.constant 0 : index
    %2 = vector.load %arg2[%c8, %c0_3] : memref<16x1xf32, #tpu.memory_space<vmem>>, vector<8x1xf32>
    %3 = vector.broadcast %1 : vector<8x1xf32> to vector<8x1089xf32>
    %4 = vector.broadcast %0 : vector<1x1089xf32> to vector<8x1089xf32>
    %5 = arith.mulf %3, %4 : vector<8x1089xf32>
    %6 = vector.broadcast %2 : vector<8x1xf32> to vector<8x1089xf32>
    %7 = arith.addf %5, %6 : vector<8x1089xf32>
    %c0_4 = arith.constant 0 : index
    %c0_5 = arith.constant 0 : index
    %8 = vector.load %arg3[%c0_4, %c0_5] : memref<8x1089xf32, #tpu.memory_space<vmem>>, vector<8x1089xf32>
    tpu.vector_store %arg3[%c0_4, %c0_5], %7 {strides = array<i32>} : memref<8x1089xf32, #tpu.memory_space<vmem>>, vector<8x1089xf32>,
    return
  }
  func.func @transform_0(%arg0: i32) -> (i32, i32) {
    %c0_i32 = arith.constant 0 : i32
    %c0_i32_0 = arith.constant 0 : i32
    %c0_i32_1 = arith.constant 0 : i32
    return %c0_i32, %c0_i32_0 : i32, i32
  }
  func.func @transform_1(%arg0: i32) -> (i32, i32) {
    %c0_i32 = arith.constant 0 : i32
    %c0_i32_0 = arith.constant 0 : i32
    %c0_i32_1 = arith.constant 0 : i32
    return %c0_i32, %c0_i32_0 : i32, i32
  }
  func.func @transform_2(%arg0: i32) -> (i32, i32) {
    %c0_i32 = arith.constant 0 : i32
    %c0_i32_0 = arith.constant 0 : i32
    %c0_i32_1 = arith.constant 0 : i32
    return %c0_i32, %c0_i32_0 : i32, i32
  }
}

</mosaic_0001>

<bundles_post_ra>
// kernel: model_forward.1
= control target key start
LH: loop header
LB: loop body
LE: loop exit
PB: predicated region body
PF: predicated region fallthrough
CT: control target
= control target key end

     0   :  { %v107_v0 = vmov 0   ;;  %v22_v3 = vlaneseq  ;;  %vm98_vm0 = vcmask 531456   ;;  %s163_s1 = inlined_call_operand.vmem [shape: f32[16,1], index: 1, kind: input, shape index: {}]   ;;  %s164_s0 = inlined_call_operand.vmem [shape: f32[1,1089], index: 0, kind: input, shape index: {}]   ;;  %s165_s2 = inlined_call_operand.vmem [shape: f32[8,1089], index: 2, kind: output, shape index: {}]  }
   0x1   :  { %106 = vset.pattern.permute.xlu0 %v107_v0  ;;  %v13_v1 = vld [vmem:[%s163_s1] sm:$0xff]  ;;  %v14_v2 = vld [vmem:[%s163_s1 + $0x8] sm:$0xff] }
   0x2   :  { %17 = vperm.xlu0 %106, %v13_v1   ;;  %v23_v4 = vshrl.u32 %v22_v3, 7  ;;  %v11_v10 = vld [vmem:[%s164_s0] sm:$0xff]  ;;  %v104_v23 = vld [vmem:[%s164_s0 + $0x8] ss:$0 sm:$0xff] }
   0x4   :  { %v24_v5 = vsub.s32 0, %v23_v4  ;;  %v28_v6 = vsub.s32 1, %v23_v4  ;;  %v32_v7 = vsub.s32 2, %v23_v4  ;;  %v36_v8 = vsub.s32 3, %v23_v4 }
   0x5   :  { %v40_v9 = vsub.s32 4, %v23_v4  ;;  %v44_v11 = vsub.s32 5, %v23_v4  ;;  %v48_v12 = vsub.s32 6, %v23_v4  ;;  %v52_v13 = vsub.s32 7, %v23_v4 }
   0x6   :  { %78 = vperm.xlu0 %106, %v14_v2   ;;  %v25_v14 = vrot.slane %v11_v10, %v24_v5  ;;  %v29_v15 = vrot.slane %v11_v10, %v28_v6  ;;  %v33_v16 = vrot.slane %v11_v10, %v32_v7  ;;  %v37_v17 = vrot.slane %v11_v10, %v36_v8 }
   0x7   :  { %v41_v18 = vrot.slane %v11_v10, %v40_v9  ;;  %v45_v20 = vrot.slane %v11_v10, %v44_v11  ;;  %v49_v21 = vrot.slane %v11_v10, %v48_v12  ;;  %v53_v22 = vrot.slane %v11_v10, %v52_v13 }
  0x81   :  { %v18_v19 = vpop.permute.xlu0 %17 }
  0x82   :  { %v67_v24 = vmul.f32 %v25_v14, %v18_v19  ;;  %v68_v25 = vmul.f32 %v29_v15, %v18_v19  ;;  %v69_v26 = vmul.f32 %v33_v16, %v18_v19  ;;  %v70_v27 = vmul.f32 %v37_v17, %v18_v19 }
  0x83   :  { %v71_v28 = vmul.f32 %v41_v18, %v18_v19  ;;  %v72_v30 = vmul.f32 %v45_v20, %v18_v19  ;;  %v73_v31 = vmul.f32 %v49_v21, %v18_v19  ;;  %v74_v32 = vmul.f32 %v53_v22, %v18_v19 }
  0x84   :  { %v75_v33 = vmul.f32 %v104_v23, %v18_v19 }
  0x85   :  { %v79_v29 = vpop.permute.xlu0 %78 }
  0x86   :  { %v81_v34 = vadd.f32 %v79_v29, %v67_v24  ;;  %v82_v35 = vadd.f32 %v79_v29, %v68_v25  ;;  %v83_v36 = vadd.f32 %v79_v29, %v69_v26  ;;  %v84_v37 = vadd.f32 %v79_v29, %v70_v27 }
  0x87   :  { %v85_v38 = vadd.f32 %v79_v29, %v71_v28  ;;  %v86_v39 = vadd.f32 %v79_v29, %v72_v30  ;;  %v87_v40 = vadd.f32 %v79_v29, %v73_v31  ;;  %v88_v41 = vadd.f32 %v79_v29, %v74_v32 }
  0x88   :  { %v89_v42 = vadd.f32 %v79_v29, %v75_v33  ;;  %90 = vst [vmem:[%s165_s2] sm:$0xff] %v81_v34  ;;  %91 = vst [vmem:[%s165_s2 + $0x8] sm:$0xff] %v82_v35 }
  0x89   :  { %92 = vst [vmem:[%s165_s2 + $0x10] sm:$0xff] %v83_v36  ;;  %93 = vst [vmem:[%s165_s2 + $0x18] sm:$0xff] %v84_v37 }
  0x8a   :  { %94 = vst [vmem:[%s165_s2 + $0x20] sm:$0xff] %v85_v38  ;;  %95 = vst [vmem:[%s165_s2 + $0x28] sm:$0xff] %v86_v39 }
  0x8b   :  { %96 = vst [vmem:[%s165_s2 + $0x30] sm:$0xff] %v87_v40  ;;  %97 = vst [vmem:[%s165_s2 + $0x38] sm:$0xff] %v88_v41 }
  0x8c   :  { %99 = vst.msk [vmem:[%s165_s2 + $0x40] sm:$0xff] %vm98_vm0, %v89_v42 }

</bundles_post_ra>
